<compile_context>
chip_gen: v5e
topology: v5e:2x2
jax: 0.10.0
libtpu: 0.0.40
codegen_flags: <defaults>
</compile_context>

<pallas_src>
import functools

import jax
import jax.numpy as jnp
from jax.experimental import pallas as pl
from jax.experimental.pallas import tpu as pltpu


def _itm3x3_kernel(x_ref, w_ref, b_ref, o_ref, *, H, W, regression):
    # x_ref: (N, Cin, H*W)   NCHW input with spatial dims flattened (lane-dense)
    # w_ref: (Cout, 9*Cin)   conv weight, columns ordered (kh, kw, ci)
    # b_ref: (Cout, 1)       bias
    # o_ref: (N, Cout, H*W)  output, lane-dense last dim (multiple of 128)
    N, Cin, HW = x_ref.shape
    Cout = o_ref.shape[1]

    x = x_ref[...]  # (N, Cin, HW)

    # Zero-pad the flattened spatial axis by W+1 on each side: accesses that
    # fall off the top/bottom image rows land in the zero pad; accesses that
    # fall off the left/right image columns are masked out below.
    zpad = jnp.zeros((N, Cin, W + 1), dtype=x.dtype)
    xp = jnp.concatenate([zpad, x, zpad], axis=2)  # (N, Cin, HW + 2W + 2)

    # Column index (w) of every flattened spatial position -> lane masks.
    col = jax.lax.broadcasted_iota(jnp.int32, (1, 1, HW), 2) % W

    # Build the im2col patch tensor: one shifted + masked lane-slice per tap,
    # stacked along the channel axis -> (N, 9*Cin, HW).
    taps = []
    for dh in (-1, 0, 1):
        for dw in (-1, 0, 1):
            off = (W + 1) + dh * W + dw       # static slice start, always >= 0
            t = xp[:, :, off:off + HW]        # (N, Cin, HW)
            if dw == -1:
                t = jnp.where(col >= 1, t, 0.0)
            elif dw == 1:
                t = jnp.where(col <= W - 2, t, 0.0)
            taps.append(t)
    patches = jnp.concatenate(taps, axis=1)   # (N, 9*Cin, HW)

    wm = w_ref[...]                           # (Cout, 9*Cin)
    b = b_ref[...]                            # (Cout, 1)

    # N is tiny and static -> unrolled.  (For large N, add a "parallel" batch
    # grid axis instead so v7x can shard it across its two TensorCores.)
    for n in range(N):
        acc = jnp.dot(wm, patches[n], preferred_element_type=jnp.float32)
        acc = acc + b                         # (Cout, HW), fp32
        if regression:
            # softplus(x) = max(x, 0) + log1p(exp(-|x|))  (numerically stable,
            # matches torch.nn.functional.softplus with beta=1)
            sp = jnp.maximum(acc, 0.0) + jnp.log1p(jnp.exp(-jnp.abs(acc)))
            acc = 2.0 * sp - 1.0
        o_ref[n] = acc.astype(o_ref.dtype)


def itm3x3_forward(x_nchw, weight_hwio, bias, *, regression=True):
    """x_nchw: (N, Cin, H, W) float32.  Returns (N, Cout, H, W) float32."""
    N, Cin, H, W = x_nchw.shape
    Cout = weight_hwio.shape[-1]
    HW = H * W

    # The wrapper does only free contiguous reshapes plus ~1 KB of parameter
    # prep; no transposes or padding of the activation tensor in HBM.
    x_flat = x_nchw.reshape(N, Cin, HW)
    w_mat = jnp.transpose(weight_hwio.reshape(9 * Cin, Cout))   # (Cout, 9*Cin)
    b_col = bias.reshape(Cout, 1)

    kernel = functools.partial(_itm3x3_kernel, H=H, W=W, regression=regression)

    out_flat = pl.pallas_call(
        kernel,
        out_shape=jax.ShapeDtypeStruct((N, Cout, HW), x_nchw.dtype),
        grid_spec=pltpu.PrefetchScalarGridSpec(
            num_scalar_prefetch=0,
            grid=(1,),                        # whole batch in one grid step
            in_specs=[
                pl.BlockSpec((N, Cin, HW), lambda i: (0, 0, 0)),
                pl.BlockSpec((Cout, 9 * Cin), lambda i: (0, 0)),
                pl.BlockSpec((Cout, 1), lambda i: (0, 0)),
            ],
            out_specs=pl.BlockSpec((N, Cout, HW), lambda i: (0, 0, 0)),
        ),
        compiler_params=pltpu.CompilerParams(
            dimension_semantics=("arbitrary",)),
    )(x_flat, w_mat, b_col)

    # (N, Cout, H*W) -> (N, Cout, H, W): contiguous split, no transpose.
    return out_flat.reshape(N, Cout, H, W)


def _reference(x_nchw, weight_hwio, bias, *, regression=True):
    out = jax.lax.conv_general_dilated(
        x_nchw, jnp.transpose(weight_hwio, (3, 2, 0, 1)),  # HWIO -> OIHW
        window_strides=(1, 1), padding=((1, 1), (1, 1)),
        dimension_numbers=("NCHW", "OIHW", "NCHW"))
    out = out + bias.reshape(1, -1, 1, 1)
    if regression:
        out = 2.0 * jax.nn.softplus(out) - 1.0
    return out


if __name__ == "__main__":
    N, Cin, Cout, H, W = 2, 4, 8, 16, 16

    key = jax.random.PRNGKey(0)
    kx, kw, kb = jax.random.split(key, 3)

    x = jax.random.normal(kx, (N, Cin, H, W), dtype=jnp.float32)
    # Deterministic "init" of the conv parameters (HWIO layout).
    weight = jax.random.normal(kw, (3, 3, Cin, Cout), dtype=jnp.float32) * 0.1
    bias = jax.random.normal(kb, (Cout,), dtype=jnp.float32) * 0.1

    out = itm3x3_forward(x, weight, bias, regression=True)
    out = jax.block_until_ready(out)

    ref = _reference(x, weight, bias, regression=True)
    assert out.shape == (N, Cout, H, W)
    assert jnp.allclose(out, ref, atol=1e-2, rtol=1e-2)

    print("KERNEL_OK")
</pallas_src>

<mosaic_0001>
module attributes {stable_mosaic.version = 11 : i64} {
  func.func @_itm3x3_kernel(%arg0: i32, %arg1: memref<2x4x256xf32, #tpu.memory_space<vmem>>, %arg2: memref<8x36xf32, #tpu.memory_space<vmem>>, %arg3: memref<8x1xf32, #tpu.memory_space<vmem>>, %arg4: memref<2x8x256xf32, #tpu.memory_space<vmem>>) attributes {dimension_semantics = [#tpu.dimension_semantics<arbitrary>], iteration_bounds = array<i64: 1>, scalar_prefetch = 0 : i64, scratch_operands = 0 : i64, tpu.core_type = #tpu.core_type<tc>, window_params = [{pipeline_mode = #tpu.pipeline_mode<synchronous>, transform_indices = @transform_0, window_bounds = array<i64: 2, 4, 256>}, {pipeline_mode = #tpu.pipeline_mode<synchronous>, transform_indices = @transform_1, window_bounds = array<i64: 8, 36>}, {pipeline_mode = #tpu.pipeline_mode<synchronous>, transform_indices = @transform_2, window_bounds = array<i64: 8, 1>}, {pipeline_mode = #tpu.pipeline_mode<synchronous>, transform_indices = @transform_3, window_bounds = array<i64: 2, 8, 256>}]} {
    %c0 = arith.constant 0 : index
    %c0_0 = arith.constant 0 : index
    %c0_1 = arith.constant 0 : index
    %0 = vector.load %arg1[%c0, %c0_0, %c0_1] : memref<2x4x256xf32, #tpu.memory_space<vmem>>, vector<2x4x256xf32>
    %cst = arith.constant 0.000000e+00 : f32
    %1 = vector.broadcast %cst : f32 to vector<2x4x17xf32>
    %2 = tpu.concatenate %1, %0, %1 in 2 : vector<2x4x17xf32>, vector<2x4x256xf32>, vector<2x4x17xf32> -> vector<2x4x290xf32>
    %3 = tpu.iota {dimensions = array<i32: 2>} : vector<1x1x256xi32>
    %c16_i32 = arith.constant 16 : i32
    %c0_i32 = arith.constant 0 : i32
    %4 = arith.cmpi eq, %c16_i32, %c0_i32 : i32
    %c1_i32 = arith.constant 1 : i32
    %5 = arith.select %4, %c1_i32, %c16_i32 : i32
    %6 = vector.broadcast %5 : i32 to vector<1x1x256xi32>
    %7 = arith.remsi %3, %6 : vector<1x1x256xi32>
    %c0_i32_2 = arith.constant 0 : i32
    %8 = vector.broadcast %c0_i32_2 : i32 to vector<1x1x256xi32>
    %9 = arith.cmpi ne, %7, %8 : vector<1x1x256xi32>
    %c0_i32_3 = arith.constant 0 : i32
    %10 = vector.broadcast %c0_i32_3 : i32 to vector<1x1x256xi32>
    %11 = arith.cmpi slt, %7, %10 : vector<1x1x256xi32>
    %c0_i32_4 = arith.constant 0 : i32
    %12 = arith.cmpi slt, %5, %c0_i32_4 : i32
    %13 = vector.broadcast %12 : i1 to vector<1x1x256xi1>
    %14 = vector.broadcast %13 : vector<1x1x256xi1> to vector<1x1x256xi1>
    %15 = arith.xori %11, %14 : vector<1x1x256xi1>
    %16 = arith.andi %15, %9 : vector<1x1x256xi1>
    %17 = vector.broadcast %5 : i32 to vector<1x1x256xi32>
    %18 = arith.addi %7, %17 : vector<1x1x256xi32>
    %19 = arith.select %16, %18, %7 : vector<1x1x256xi1>, vector<1x1x256xi32>
    %20 = vector.extract_strided_slice %2 {offsets = [0, 0, 0], sizes = [2, 4, 256], strides = [1, 1, 1]} : vector<2x4x290xf32> to vector<2x4x256xf32>
    %c1_i32_5 = arith.constant 1 : i32
    %21 = vector.broadcast %c1_i32_5 : i32 to vector<1x1x256xi32>
    %22 = arith.cmpi sge, %19, %21 : vector<1x1x256xi32>
    %cst_6 = arith.constant 0.000000e+00 : f32
    %23 = vector.shape_cast %22 : vector<1x1x256xi1> to vector<1x1x256xi1>
    %24 = vector.broadcast %23 : vector<1x1x256xi1> to vector<2x4x256xi1>
    %25 = vector.broadcast %cst_6 : f32 to vector<2x4x256xf32>
    %26 = arith.select %24, %20, %25 : vector<2x4x256xi1>, vector<2x4x256xf32>
    %27 = vector.extract_strided_slice %2 {offsets = [0, 0, 1], sizes = [2, 4, 256], strides = [1, 1, 1]} : vector<2x4x290xf32> to vector<2x4x256xf32>
    %28 = vector.extract_strided_slice %2 {offsets = [0, 0, 2], sizes = [2, 4, 256], strides = [1, 1, 1]} : vector<2x4x290xf32> to vector<2x4x256xf32>
    %c14_i32 = arith.constant 14 : i32
    %29 = vector.broadcast %c14_i32 : i32 to vector<1x1x256xi32>
    %30 = arith.cmpi sle, %19, %29 : vector<1x1x256xi32>
    %cst_7 = arith.constant 0.000000e+00 : f32
    %31 = vector.shape_cast %30 : vector<1x1x256xi1> to vector<1x1x256xi1>
    %32 = vector.broadcast %31 : vector<1x1x256xi1> to vector<2x4x256xi1>
    %33 = vector.broadcast %cst_7 : f32 to vector<2x4x256xf32>
    %34 = arith.select %32, %28, %33 : vector<2x4x256xi1>, vector<2x4x256xf32>
    %35 = vector.extract_strided_slice %2 {offsets = [0, 0, 16], sizes = [2, 4, 256], strides = [1, 1, 1]} : vector<2x4x290xf32> to vector<2x4x256xf32>
    %c1_i32_8 = arith.constant 1 : i32
    %36 = vector.broadcast %c1_i32_8 : i32 to vector<1x1x256xi32>
    %37 = arith.cmpi sge, %19, %36 : vector<1x1x256xi32>
    %cst_9 = arith.constant 0.000000e+00 : f32
    %38 = vector.shape_cast %37 : vector<1x1x256xi1> to vector<1x1x256xi1>
    %39 = vector.broadcast %38 : vector<1x1x256xi1> to vector<2x4x256xi1>
    %40 = vector.broadcast %cst_9 : f32 to vector<2x4x256xf32>
    %41 = arith.select %39, %35, %40 : vector<2x4x256xi1>, vector<2x4x256xf32>
    %42 = vector.extract_strided_slice %2 {offsets = [0, 0, 17], sizes = [2, 4, 256], strides = [1, 1, 1]} : vector<2x4x290xf32> to vector<2x4x256xf32>
    %43 = vector.extract_strided_slice %2 {offsets = [0, 0, 18], sizes = [2, 4, 256], strides = [1, 1, 1]} : vector<2x4x290xf32> to vector<2x4x256xf32>
    %c14_i32_10 = arith.constant 14 : i32
    %44 = vector.broadcast %c14_i32_10 : i32 to vector<1x1x256xi32>
    %45 = arith.cmpi sle, %19, %44 : vector<1x1x256xi32>
    %cst_11 = arith.constant 0.000000e+00 : f32
    %46 = vector.shape_cast %45 : vector<1x1x256xi1> to vector<1x1x256xi1>
    %47 = vector.broadcast %46 : vector<1x1x256xi1> to vector<2x4x256xi1>
    %48 = vector.broadcast %cst_11 : f32 to vector<2x4x256xf32>
    %49 = arith.select %47, %43, %48 : vector<2x4x256xi1>, vector<2x4x256xf32>
    %50 = vector.extract_strided_slice %2 {offsets = [0, 0, 32], sizes = [2, 4, 256], strides = [1, 1, 1]} : vector<2x4x290xf32> to vector<2x4x256xf32>
    %c1_i32_12 = arith.constant 1 : i32
    %51 = vector.broadcast %c1_i32_12 : i32 to vector<1x1x256xi32>
    %52 = arith.cmpi sge, %19, %51 : vector<1x1x256xi32>
    %cst_13 = arith.constant 0.000000e+00 : f32
    %53 = vector.shape_cast %52 : vector<1x1x256xi1> to vector<1x1x256xi1>
    %54 = vector.broadcast %53 : vector<1x1x256xi1> to vector<2x4x256xi1>
    %55 = vector.broadcast %cst_13 : f32 to vector<2x4x256xf32>
    %56 = arith.select %54, %50, %55 : vector<2x4x256xi1>, vector<2x4x256xf32>
    %57 = vector.extract_strided_slice %2 {offsets = [0, 0, 33], sizes = [2, 4, 256], strides = [1, 1, 1]} : vector<2x4x290xf32> to vector<2x4x256xf32>
    %58 = vector.extract_strided_slice %2 {offsets = [0, 0, 34], sizes = [2, 4, 256], strides = [1, 1, 1]} : vector<2x4x290xf32> to vector<2x4x256xf32>
    %c14_i32_14 = arith.constant 14 : i32
    %59 = vector.broadcast %c14_i32_14 : i32 to vector<1x1x256xi32>
    %60 = arith.cmpi sle, %19, %59 : vector<1x1x256xi32>
    %cst_15 = arith.constant 0.000000e+00 : f32
    %61 = vector.shape_cast %60 : vector<1x1x256xi1> to vector<1x1x256xi1>
    %62 = vector.broadcast %61 : vector<1x1x256xi1> to vector<2x4x256xi1>
    %63 = vector.broadcast %cst_15 : f32 to vector<2x4x256xf32>
    %64 = arith.select %62, %58, %63 : vector<2x4x256xi1>, vector<2x4x256xf32>
    %65 = tpu.concatenate %26, %27, %34, %41, %42, %49, %56, %57, %64 in 1 : vector<2x4x256xf32>, vector<2x4x256xf32>, vector<2x4x256xf32>, vector<2x4x256xf32>, vector<2x4x256xf32>, vector<2x4x256xf32>, vector<2x4x256xf32>, vector<2x4x256xf32>, vector<2x4x256xf32> -> vector<2x36x256xf32>
    %c0_16 = arith.constant 0 : index
    %c0_17 = arith.constant 0 : index
    %66 = vector.load %arg2[%c0_16, %c0_17] : memref<8x36xf32, #tpu.memory_space<vmem>>, vector<8x36xf32>
    %c0_18 = arith.constant 0 : index
    %c0_19 = arith.constant 0 : index
    %67 = vector.load %arg3[%c0_18, %c0_19] : memref<8x1xf32, #tpu.memory_space<vmem>>, vector<8x1xf32>
    %68 = vector.extract_strided_slice %65 {offsets = [0, 0, 0], sizes = [1, 36, 256], strides = [1, 1, 1]} : vector<2x36x256xf32> to vector<1x36x256xf32>
    %69 = vector.shape_cast %68 : vector<1x36x256xf32> to vector<36x256xf32>
    %cst_20 = arith.constant dense<0.000000e+00> : vector<8x256xf32>
    %70 = tpu.matmul %66, %69, %cst_20 {dimension_numbers = #tpu.dot_dimension_numbers<[1], [0], [0], [1], [0, 0, 1, 1], [], []>} : vector<8x36xf32>, vector<36x256xf32>, vector<8x256xf32> -> vector<8x256xf32>
    %71 = vector.broadcast %67 : vector<8x1xf32> to vector<8x256xf32>
    %72 = arith.addf %70, %71 : vector<8x256xf32>
    %cst_21 = arith.constant 0.000000e+00 : f32
    %73 = vector.broadcast %cst_21 : f32 to vector<8x256xf32>
    %74 = arith.maximumf %72, %73 : vector<8x256xf32>
    %75 = math.absf %72 : vector<8x256xf32>
    %cst_22 = arith.constant 0.000000e+00 : f32
    %76 = vector.broadcast %cst_22 : f32 to vector<8x256xf32>
    %77 = arith.subf %76, %75 : vector<8x256xf32>
    %78 = math.exp %77 : vector<8x256xf32>
    %79 = math.log1p %78 : vector<8x256xf32>
    %80 = arith.addf %74, %79 : vector<8x256xf32>
    %cst_23 = arith.constant 2.000000e+00 : f32
    %81 = vector.broadcast %cst_23 : f32 to vector<8x256xf32>
    %82 = arith.mulf %81, %80 : vector<8x256xf32>
    %cst_24 = arith.constant 1.000000e+00 : f32
    %83 = vector.broadcast %cst_24 : f32 to vector<8x256xf32>
    %84 = arith.subf %82, %83 : vector<8x256xf32>
    %c0_25 = arith.constant 0 : index
    %c0_26 = arith.constant 0 : index
    %c0_27 = arith.constant 0 : index
    %85 = vector.load %arg4[%c0_25, %c0_26, %c0_27] : memref<2x8x256xf32, #tpu.memory_space<vmem>>, vector<1x8x256xf32>
    %86 = vector.shape_cast %85 : vector<1x8x256xf32> to vector<8x256xf32>
    %87 = vector.shape_cast %84 : vector<8x256xf32> to vector<1x8x256xf32>
    tpu.vector_store %arg4[%c0_25, %c0_26, %c0_27], %87 {strides = array<i32>} : memref<2x8x256xf32, #tpu.memory_space<vmem>>, vector<1x8x256xf32>,
    %88 = vector.extract_strided_slice %65 {offsets = [1, 0, 0], sizes = [1, 36, 256], strides = [1, 1, 1]} : vector<2x36x256xf32> to vector<1x36x256xf32>
    %89 = vector.shape_cast %88 : vector<1x36x256xf32> to vector<36x256xf32>
    %cst_28 = arith.constant dense<0.000000e+00> : vector<8x256xf32>
    %90 = tpu.matmul %66, %89, %cst_28 {dimension_numbers = #tpu.dot_dimension_numbers<[1], [0], [0], [1], [0, 0, 1, 1], [], []>} : vector<8x36xf32>, vector<36x256xf32>, vector<8x256xf32> -> vector<8x256xf32>
    %91 = vector.broadcast %67 : vector<8x1xf32> to vector<8x256xf32>
    %92 = arith.addf %90, %91 : vector<8x256xf32>
    %cst_29 = arith.constant 0.000000e+00 : f32
    %93 = vector.broadcast %cst_29 : f32 to vector<8x256xf32>
    %94 = arith.maximumf %92, %93 : vector<8x256xf32>
    %95 = math.absf %92 : vector<8x256xf32>
    %cst_30 = arith.constant 0.000000e+00 : f32
    %96 = vector.broadcast %cst_30 : f32 to vector<8x256xf32>
    %97 = arith.subf %96, %95 : vector<8x256xf32>
    %98 = math.exp %97 : vector<8x256xf32>
    %99 = math.log1p %98 : vector<8x256xf32>
    %100 = arith.addf %94, %99 : vector<8x256xf32>
    %cst_31 = arith.constant 2.000000e+00 : f32
    %101 = vector.broadcast %cst_31 : f32 to vector<8x256xf32>
    %102 = arith.mulf %101, %100 : vector<8x256xf32>
    %cst_32 = arith.constant 1.000000e+00 : f32
    %103 = vector.broadcast %cst_32 : f32 to vector<8x256xf32>
    %104 = arith.subf %102, %103 : vector<8x256xf32>
    %c1 = arith.constant 1 : index
    %c0_33 = arith.constant 0 : index
    %c0_34 = arith.constant 0 : index
    %105 = vector.load %arg4[%c1, %c0_33, %c0_34] : memref<2x8x256xf32, #tpu.memory_space<vmem>>, vector<1x8x256xf32>
    %106 = vector.shape_cast %105 : vector<1x8x256xf32> to vector<8x256xf32>
    %107 = vector.shape_cast %104 : vector<8x256xf32> to vector<1x8x256xf32>
    tpu.vector_store %arg4[%c1, %c0_33, %c0_34], %107 {strides = array<i32>} : memref<2x8x256xf32, #tpu.memory_space<vmem>>, vector<1x8x256xf32>,
    return
  }
  func.func @transform_0(%arg0: i32) -> (i32, i32, i32) {
    %c0_i32 = arith.constant 0 : i32
    %c0_i32_0 = arith.constant 0 : i32
    %c0_i32_1 = arith.constant 0 : i32
    %c0_i32_2 = arith.constant 0 : i32
    return %c0_i32, %c0_i32_0, %c0_i32_1 : i32, i32, i32
  }
  func.func @transform_1(%arg0: i32) -> (i32, i32) {
    %c0_i32 = arith.constant 0 : i32
    %c0_i32_0 = arith.constant 0 : i32
    %c0_i32_1 = arith.constant 0 : i32
    return %c0_i32, %c0_i32_0 : i32, i32
  }
  func.func @transform_2(%arg0: i32) -> (i32, i32) {
    %c0_i32 = arith.constant 0 : i32
    %c0_i32_0 = arith.constant 0 : i32
    %c0_i32_1 = arith.constant 0 : i32
    return %c0_i32, %c0_i32_0 : i32, i32
  }
  func.func @transform_3(%arg0: i32) -> (i32, i32, i32) {
    %c0_i32 = arith.constant 0 : i32
    %c0_i32_0 = arith.constant 0 : i32
    %c0_i32_1 = arith.constant 0 : i32
    %c0_i32_2 = arith.constant 0 : i32
    return %c0_i32, %c0_i32_0, %c0_i32_1 : i32, i32, i32
  }
}

</mosaic_0001>

<bundles_post_ra>
// kernel: tpu_custom_call.1
= control target key start
LH: loop header
LB: loop body
LE: loop exit
PB: predicated region body
PF: predicated region fallthrough
CT: control target
= control target key end

     0   :  { %8 = vsyncpa [#allocation3], 0  ;;  %s1052_s0 = inlined_call_operand.hbm [shape: f32[2,4,256], index: 0, kind: input, shape index: {}]   ;;  %s1053_s1 = inlined_call_operand.vmem [shape: f32[8,36], index: 1, kind: input, shape index: {}]   ;;  %s1054_s2 = inlined_call_operand.vmem [shape: f32[8,1], index: 2, kind: input, shape index: {}]   ;;  %s1055_s3 = inlined_call_operand.hbm [shape: f32[2,8,256], index: 3, kind: output, shape index: {}]  }
   0x1   :  { %9 = vsyncpa [#allocation4], 0  ;;  %s14_s14 = sshll.u32 %s1052_s0, 4  ;;  %s743_s15 = smov [#allocation2]   ;;  %s15_s14 = int_to_ptr.hbm [resolvable:$true] %s14_s14 }
   0x2   :  { %s16_s16 = sshll.u32 %s743_s15, 4  ;;  %s744_s17 = smov 128   ;;  %s17_s16 = int_to_ptr.vmem [resolvable:$true] %s16_s16 }
   0x3   :  { %s745_s18 = smov 8  }
   0x4   :  { %22 = dma.hbm_to_vmem [thread:$0]  %s15_s14, 256, %s17_s16, [#allocation3], %s744_s17, %s744_s17, %s745_s18  }
   0x5   :  { %739 = dma.done.wait [#allocation3], 256  }
   0x6   :  { %740 = vsyncadd [#allocation3], 4294967040  ;;  %v32_v0 = vld [vmem:[#allocation2 + $0x8] sm:$0xff]  ;;  %v31_v1 = vld [vmem:[#allocation2] sm:$0xff]  ;;  %s746_s19 = smov 17   ;;  %vm50_vm0 = vcmask 138240   ;;  %v63_v28 = vlaneseq }
   0x7   :  { %39 = vst [vmem:[#allocation1 + $0x10] ss:$2 sm:$0xff] %v32_v0  ;;  %s747_s0 = smov 94   ;;  %s748_s20 = smov 110   ;;  %vm222_vm1 = vcmask 769024   ;;  %vm328_vm3 = vcmask 1043456  }
   0x8   :  { %35 = vst [vmem:[#allocation1] ss:$2 sm:$0xff] %v31_v1  ;;  %s749_s21 = smov 96   ;;  %s750_s22 = smov 111   ;;  %v64_v30 = vand.u32 127, %v63_v28  ;;  %vm172_vm5 = vcmask 900096  }
   0x9   :  { %s751_s23 = smov 112   ;;  %s752_s24 = smov 126   ;;  %vm147_vm6 = vcmask 916480   ;;  %vm197_vm7 = vcmask 785408   ;;  %vm122_vm9 = vcmask 1031168   ;;  %vm319_vm10 = vcmask 777216  }
   0xa   :  { %s753_s25 = smov 95   ;;  %s754_s26 = smov 127   ;;  %v70_v31 = vand.u32 15, %v64_v30  ;;  %v832_v38 = vadd.s32 128, %v64_v30  ;;  %vm286_vm11 = vcmask 908288   ;;  %vm253_vm13 = vcmask 1039360  }
   0xb   :  { %vm352_vm14 = vcmask 293888   ;;  %s527_s6 = sshll.u32 %s1055_s3, 4  ;;  %s757_s7 = smov 256   ;;  %s528_s6 = int_to_ptr.hbm [resolvable:$true] %s527_s6 }
   0xc   :  { %vm820_vm2 = vcmp.le.s32.totalorder %v70_v31, 14  ;;  %v77_v39 = vand.u32 15, %v832_v38  ;;  %vm875_vm8 = vcmp.ge.s32.totalorder %v70_v31, 1  ;;  %v346_v38 = vld [vmem:[%s1054_s2] sm:$0xff]  ;;  %s758_s8 = smov 16  }
   0xe   :  { %v40_v2 = vld.sshfl [vmem:[#allocation1 + $0x10] sm:$0xff pattern:$0x75316420]  ;;  %v41_v4 = vld.sshfl [vmem:[#allocation1 + $0x18] sm:$0xff pattern:$0x75316420] }
   0xf   :  { %46 = vrot.lane.b32.xlu0 %v40_v2, %s746_s19  ;;  %v36_v3 = vld.sshfl [vmem:[#allocation1] sm:$0xff pattern:$0x75316420]  ;;  %v37_v5 = vld.sshfl [vmem:[#allocation1 + $0x8] sm:$0xff pattern:$0x75316420] }
  0x10   :  { %42 = vrot.lane.b32.xlu1 %v36_v3, %s746_s19  ;;  %vm837_vm4 = vcmp.le.s32.totalorder %v77_v39, 14  ;;  %vm918_vm12 = vcmp.ge.s32.totalorder %v77_v39, 1  ;;  %v755_v39 = vmov 0  }
  0x11   :  { %673 = vset.pattern.permute.xlu1 %v755_v39  ;;  %674 = vset.pattern.permute.xlu0 %v755_v39 }
  0x17   :  { %48 = vrot.lane.b32.xlu0 %v41_v4, %s746_s19 }
  0x18   :  { %44 = vrot.lane.b32.xlu1 %v37_v5, %s746_s19 }
  0x81   :  { %v47_v6 = vpop.permute.xlu0 %46 }
  0x82   :  { %v783_v7 = vsel %vm50_vm0, 0.0, %v47_v6  ;;  %v43_v11 = vpop.permute.xlu1 %42 }
  0x83   :  { %216 = vrot.lane.b32.xlu2 %v783_v7, %s747_s0  ;;  %v797_v13 = vsel %vm50_vm0, 0.0, %v43_v11  ;;  %v238_v22 = vrot.slane %v783_v7, 4 }
  0x84   :  { %v235_v19 = vrot.slane %v797_v13, 4 }
  0x89   :  { %v49_v8 = vpop.permute.xlu0 %48 }
  0x8a   :  { %v788_v9 = vsel %vm50_vm0, %v47_v6, %v49_v8  ;;  %v62_v10 = vsel %vm50_vm0, %v49_v8, 0.0  ;;  %v45_v15 = vpop.permute.xlu1 %44 }
  0x8b   :  { %220 = vrot.lane.b32.xlu0 %v62_v10, %s747_s0  ;;  %218 = vrot.lane.b32.xlu2 %v788_v9, %s747_s0  ;;  %v568_v12 = vpack.i.bf16 %v788_v9, %v783_v7  ;;  %v573_v14 = vpack.i.bf16 %v797_v13, %v62_v10  ;;  %v805_v16 = vsel %vm50_vm0, %v43_v11, %v45_v15  ;;  %v61_v17 = vsel %vm50_vm0, %v45_v15, 0.0 }
  0x8c   :  { %v628_v18 = vpack.i.bf16 %v61_v17, %v805_v16  ;;  %v240_v20 = vrot.slane %v62_v10, 4  ;;  %v239_v21 = vrot.slane %v788_v9, 4  ;;  %v236_v25 = vrot.slane %v805_v16, 4 }
  0x8d   :  { %569 = vrot.lane.b32.xlu1 %v568_v12, %s748_s20  ;;  %v237_v26 = vrot.slane %v61_v17, 4  ;;  %v97_v40 = vsel %vm918_vm12, %v805_v16, 0.0 }
  0x8e   :  { %v638_v23 = vpack.i.bf16 %v235_v19, %v240_v20  ;;  %v633_v24 = vpack.i.bf16 %v239_v21, %v238_v22 }
  0x8f   :  { %v658_v27 = vpack.i.bf16 %v237_v26, %v236_v25 }
  0x93   :  { %579 = vrot.lane.b32.xlu0 %v568_v12, %s749_s21  ;;  %574 = vrot.lane.b32.xlu2 %v573_v14, %s748_s20 }
  0x95   :  { %584 = vrot.lane.b32.xlu1 %v573_v14, %s749_s21 }
  0x9b   :  { %599 = vrot.lane.b32.xlu0 %v568_v12, %s750_s22  ;;  %594 = vrot.lane.b32.xlu2 %v573_v14, %s751_s23 }
  0x9d   :  { %589 = vrot.lane.b32.xlu1 %v568_v12, %s751_s23 }
  0xa3   :  { %614 = vrot.lane.b32.xlu0 %v573_v14, %s752_s24  ;;  %609 = vrot.lane.b32.xlu2 %v568_v12, %s752_s24 }
  0xa5   :  { %604 = vrot.lane.b32.xlu1 %v573_v14, %s750_s22 }
  0xab   :  { %214 = vrot.lane.b32.xlu0 %v61_v17, %s747_s0  ;;  %212 = vrot.lane.b32.xlu2 %v805_v16, %s747_s0 }
  0xad   :  { %210 = vrot.lane.b32.xlu1 %v797_v13, %s747_s0 }
  0xb3   :  { %629 = vrot.lane.b32.xlu0 %v628_v18, %s751_s23  ;;  %624 = vrot.lane.b32.xlu2 %v628_v18, %s749_s21 }
  0xb5   :  { %619 = vrot.lane.b32.xlu1 %v628_v18, %s748_s20 }
  0xbb   :  { %639 = vrot.lane.b32.xlu0 %v638_v23, %s753_s25  ;;  %634 = vrot.lane.b32.xlu2 %v633_v24, %s753_s25 }
  0xbd   :  { %649 = vrot.lane.b32.xlu1 %v638_v23, %s754_s26 }
  0xc3   :  { %644 = vrot.lane.b32.xlu0 %v633_v24, %s754_s26  ;;  %659 = vrot.lane.b32.xlu2 %v658_v27, %s753_s25 }
  0xc5   :  { %654 = vrot.lane.b32.xlu1 %v628_v18, %s750_s22 }
  0xcb   :  { %669 = vrot.lane.b32.xlu0 %v658_v27, %s754_s26  ;;  %664 = vrot.lane.b32.xlu2 %v628_v18, %s752_s24 }
  0xcd   :  { %349 = vperm.xlu1 %673, %v346_v38  }
  0xdd   :  { %v217_v29 = vpop.permute.xlu2 %216 }
  0xe5   :  { %v219_v33 = vpop.permute.xlu2 %218 }
  0xe6   :  { %v225_v34 = vsel %vm222_vm1, %v217_v29, %v219_v33 }
  0xe7   :  { %v233_v35 = vsel %vm820_vm2, %v225_v34, 0.0 }
  0xe8   :  { %546 = vmatpush.msk.msra.mxu2 %vm328_vm3, %v233_v35 }
  0xed   :  { %v828_v36 = vpop.permute.xlu2 %574 }
  0xf5   :  { %v830_v37 = vpop.permute.xlu2 %594 }
  0xfd   :  { %v221_v41 = vpop.permute.xlu0 %220  ;;  %v841_v42 = vpop.permute.xlu2 %609 }
  0xfe   :  { %v226_v43 = vsel %vm222_vm1, %v219_v33, %v221_v41  ;;  %v612_v59 = vunpack.i.h.bf16 %v841_v42  ;;  %v611_v60 = vunpack.i.l.bf16 %v841_v42 }
  0xff   :  { %v844_v44 = vpop.permute.xlu1 %569  ;;  %v234_v45 = vsel %vm837_vm4, %v226_v43, 0.0 }
 0x100   :  { %548 = vmatpush.msk.msra.mxu3 %vm328_vm3, %v234_v45  ;;  %v572_v51 = vunpack.i.h.bf16 %v844_v44  ;;  %v571_v52 = vunpack.i.l.bf16 %v844_v44  ;;  %v125_v11 = vsel %vm122_vm9, %v611_v60, %v612_v59  ;;  %v596_v60 = vunpack.i.l.bf16 %v830_v37 }
 0x101   :  { %v133_v23 = vsel %vm820_vm2, %v125_v11, 0.0 }
 0x102   :  { %v175_v58 = vsel %vm172_vm5, %v571_v52, %v572_v51  ;;  %v576_v52 = vunpack.i.l.bf16 %v828_v36 }
 0x103   :  { %v183_v4 = vsel %vm820_vm2, %v175_v58, 0.0 }
 0x104   :  { %v301_v17 = vrot.slane %v183_v4, 4  ;;  %v176_v58 = vsel %vm172_vm5, %v572_v51, %v576_v52  ;;  %v98_v4 = vsel %vm875_vm8, %v783_v7, 0.0  ;;  %v597_v51 = vunpack.i.h.bf16 %v830_v37 }
 0x105   :  { %v849_v46 = vpop.permute.xlu0 %579  ;;  %v213_v47 = vpop.permute.xlu2 %212 }
 0x106   :  { %v582_v56 = vunpack.i.h.bf16 %v849_v46  ;;  %v581_v57 = vunpack.i.l.bf16 %v849_v46 }
 0x107   :  { %v851_v48 = vpop.permute.xlu1 %584 }
 0x108   :  { %v200_v3 = vsel %vm197_vm7, %v581_v57, %v582_v56  ;;  %v586_v57 = vunpack.i.l.bf16 %v851_v48 }
 0x109   :  { %v208_v12 = vsel %vm875_vm8, %v200_v3, 0.0  ;;  %v184_v3 = vsel %vm837_vm4, %v176_v58, 0.0 }
 0x10a   :  { %v201_v44 = vsel %vm197_vm7, %v582_v56, %v586_v57 }
 0x10b   :  { %v209_v46 = vsel %vm918_vm12, %v201_v44, 0.0 }
 0x10d   :  { %v853_v49 = vpop.permute.xlu0 %599  ;;  %v855_v50 = vpop.permute.xlu2 %624 }
 0x10e   :  { %v602_v62 = vunpack.i.h.bf16 %v853_v49  ;;  %v601_v63 = vunpack.i.l.bf16 %v853_v49  ;;  %v627_v18 = vunpack.i.h.bf16 %v855_v50  ;;  %v626_v19 = vunpack.i.l.bf16 %v855_v50 }
 0x10f   :  { %v859_v53 = vpop.permute.xlu1 %589  ;;  %v99_v49 = vsel %vm918_vm12, %v788_v9, 0.0 }
 0x110   :  { %v592_v54 = vunpack.i.h.bf16 %v859_v53  ;;  %v591_v55 = vunpack.i.l.bf16 %v859_v53  ;;  %v289_v15 = vsel %vm286_vm11, %v601_v63, %v602_v62  ;;  %v199_v27 = vsel %vm197_vm7, %v626_v19, %v627_v18 }
 0x111   :  { %v339_v22 = vsel %vm328_vm3, %v289_v15, %v301_v17  ;;  %v207_v41 = vsel %vm918_vm12, %v199_v27, 0.0 }
 0x112   :  { %v150_v61 = vsel %vm147_vm6, %v591_v55, %v592_v54 }
 0x113   :  { %v158_v8 = vsel %vm875_vm8, %v150_v61, 0.0  ;;  %v587_v61 = vunpack.i.h.bf16 %v851_v48  ;;  %v151_v48 = vsel %vm147_vm6, %v592_v54, %v596_v60 }
 0x114   :  { %v268_v21 = vrot.slane %v158_v8, 4  ;;  %v159_v37 = vsel %vm918_vm12, %v151_v48, 0.0 }
 0x115   :  { %v879_v1 = vpop.permute.xlu0 %614  ;;  %v881_v2 = vpop.permute.xlu2 %634  ;;  %v198_v15 = vsel %vm197_vm7, %v587_v61, %v626_v19 }
 0x116   :  { %v637_v5 = vunpack.i.h.bf16 %v881_v2  ;;  %v636_v6 = vunpack.i.l.bf16 %v881_v2  ;;  %v335_v26 = vsel %vm328_vm3, %v133_v23, %v268_v21  ;;  %v616_v63 = vunpack.i.l.bf16 %v879_v1 }
 0x117   :  { %v892_v10 = vpop.permute.xlu1 %604  ;;  %v206_v56 = vsel %vm875_vm8, %v198_v15, 0.0  ;;  %v269_v2 = vrot.slane %v159_v37, 4 }
 0x118   :  { %v322_v14 = vsel %vm319_vm10, %v636_v6, %v637_v5  ;;  %v577_v6 = vunpack.i.h.bf16 %v828_v36  ;;  %v606_v8 = vunpack.i.l.bf16 %v892_v10  ;;  %v126_v53 = vsel %vm122_vm9, %v612_v59, %v616_v63 }
 0x119   :  { %v343_v20 = vsel %vm328_vm3, %v208_v12, %v322_v14  ;;  %v134_v27 = vsel %vm837_vm4, %v126_v53, 0.0 }
 0x11a   :  { %456 = vmatpush.msra.mxu2 %v343_v20  ;;  %v302_v20 = vrot.slane %v184_v3, 4  ;;  %v345_v3 = vld [vmem:[%s1053_s1] sm:$0xff]  ;;  %s756_s1 = smov [#allocation5]  }
 0x11b   :  { %s525_s30 = sshll.u32 %s756_s1, 4  ;;  %s526_s30 = int_to_ptr.vmem [resolvable:$true] %s525_s30 }
 0x11c   :  { %457 = vmatpush.msra.mxu2 %v339_v22 }
 0x11d   :  { %v215_v24 = vpop.permute.xlu0 %214  ;;  %v660_v25 = vpop.permute.xlu2 %659 }
 0x11e   :  { %v662_v28 = vunpack.i.h.bf16 %v660_v25  ;;  %v661_v29 = vunpack.i.l.bf16 %v660_v25  ;;  %458 = vmatpush.msra.mxu2 %v335_v26  ;;  %v224_v30 = vsel %vm222_vm1, %v213_v47, %v215_v24  ;;  %v290_v24 = vsel %vm286_vm11, %v602_v62, %v606_v8 }
 0x11f   :  { %v211_v31 = vpop.permute.xlu1 %210  ;;  %v232_v33 = vsel %vm837_vm4, %v224_v30, 0.0 }
 0x120   :  { %542 = vmatpush.msk.msra.mxu1 %vm328_vm3, %v232_v33  ;;  %v223_v35 = vsel %vm222_vm1, %v211_v31, %v213_v47  ;;  %v321_v43 = vsel %vm319_vm10, %v661_v29, %v662_v28  ;;  %v617_v31 = vunpack.i.h.bf16 %v879_v1  ;;  %v607_v33 = vunpack.i.h.bf16 %v892_v10 }
 0x121   :  { %v231_v45 = vsel %vm820_vm2, %v223_v35, 0.0  ;;  %v342_v50 = vsel %vm328_vm3, %v207_v41, %v321_v43  ;;  %v336_v43 = vsel %vm328_vm3, %v134_v27, %v269_v2 }
 0x122   :  { %540 = vmatpush.msk.msra.mxu0 %vm328_vm3, %v231_v45  ;;  %394 = vmatpush.msra.mxu1 %v342_v50 }
 0x125   :  { %v630_v47 = vpop.permute.xlu0 %629  ;;  %v665_v54 = vpop.permute.xlu2 %664 }
 0x126   :  { %v631_v11 = vunpack.i.l.bf16 %v630_v47  ;;  %v632_v21 = vunpack.i.h.bf16 %v630_v47  ;;  %v666_v28 = vunpack.i.l.bf16 %v665_v54 }
 0x127   :  { %v620_v55 = vpop.permute.xlu1 %619 }
 0x128   :  { %v621_v12 = vunpack.i.l.bf16 %v620_v55  ;;  %v622_v17 = vunpack.i.h.bf16 %v620_v55  ;;  %v148_v26 = vsel %vm147_vm6, %v597_v51, %v631_v11  ;;  %v149_v30 = vsel %vm147_vm6, %v631_v11, %v632_v21 }
 0x129   :  { %v156_v41 = vsel %vm875_vm8, %v148_v26, 0.0  ;;  %v157_v10 = vsel %vm918_vm12, %v149_v30, 0.0  ;;  %v123_v52 = vsel %vm122_vm9, %v617_v31, %v666_v28 }
 0x12a   :  { %v173_v25 = vsel %vm172_vm5, %v577_v6, %v621_v12  ;;  %v174_v62 = vsel %vm172_vm5, %v621_v12, %v622_v17  ;;  %v266_v55 = vrot.slane %v156_v41, 4  ;;  %v267_v48 = vrot.slane %v157_v10, 4 }
 0x12b   :  { %v181_v35 = vsel %vm820_vm2, %v173_v25, 0.0  ;;  %v182_v45 = vsel %vm837_vm4, %v174_v62, 0.0 }
 0x12c   :  { %v299_v47 = vrot.slane %v181_v35, 4  ;;  %v300_v44 = vrot.slane %v182_v45, 4 }
 0x12d   :  { %v640_v14 = vpop.permute.xlu0 %639 }
 0x12e   :  { %v642_v18 = vunpack.i.h.bf16 %v640_v14  ;;  %v641_v36 = vunpack.i.l.bf16 %v640_v14 }
 0x12f   :  { %v957_v22 = vpop.permute.xlu1 %649 }
 0x130   :  { %v320_v19 = vsel %vm319_vm10, %v642_v18, %v661_v29  ;;  %v323_v23 = vsel %vm319_vm10, %v637_v5, %v641_v36  ;;  %v667_v5 = vunpack.i.h.bf16 %v665_v54  ;;  %v340_v29 = vsel %vm328_vm3, %v290_v24, %v302_v20 }
 0x131   :  { %v341_v42 = vsel %vm328_vm3, %v206_v56, %v320_v19  ;;  %v344_v59 = vsel %vm328_vm3, %v209_v46, %v323_v23  ;;  %v651_v50 = vunpack.i.l.bf16 %v957_v22  ;;  %v652_v36 = vunpack.i.h.bf16 %v957_v22 }
 0x132   :  { %374 = vmatpush.msra.mxu0 %v341_v42  ;;  %476 = vmatpush.msra.mxu3 %v344_v59  ;;  %v124_v57 = vsel %vm122_vm9, %v666_v28, %v667_v5  ;;  %v96_v46 = vsel %vm875_vm8, %v797_v13, 0.0 }
 0x133   :  { %v132_v14 = vsel %vm837_vm4, %v124_v57, 0.0 }
 0x134   :  { %477 = vmatpush.msra.mxu3 %v340_v29  ;;  %v334_v18 = vsel %vm328_vm3, %v132_v14, %v267_v48 }
 0x135   :  { %v645_v9 = vpop.permute.xlu0 %644 }
 0x136   :  { %v647_v1 = vunpack.i.h.bf16 %v645_v9  ;;  %v646_v38 = vunpack.i.l.bf16 %v645_v9  ;;  %478 = vmatpush.msra.mxu3 %v336_v43 }
 0x137   :  { %v655_v39 = vpop.permute.xlu1 %654 }
 0x138   :  { %v657_v58 = vunpack.i.h.bf16 %v655_v39  ;;  %v656_v60 = vunpack.i.l.bf16 %v655_v39  ;;  %v256_v61 = vsel %vm253_vm13, %v646_v38, %v647_v1  ;;  %v257_v63 = vsel %vm253_vm13, %v647_v1, %v651_v50 }
 0x139   :  { %v331_v6 = vsel %vm328_vm3, %v98_v4, %v256_v61  ;;  %v332_v8 = vsel %vm328_vm3, %v99_v49, %v257_v63  ;;  %v131_v4 = vsel %vm820_vm2, %v123_v52, 0.0 }
 0x13a   :  { %459 = vmatpush.msra.mxu2 %v331_v6  ;;  %479 = vmatpush.msra.mxu3 %v332_v8  ;;  %v287_v51 = vsel %vm286_vm11, %v607_v33, %v656_v60  ;;  %v288_v11 = vsel %vm286_vm11, %v656_v60, %v657_v58  ;;  %v333_v17 = vsel %vm328_vm3, %v131_v4, %v266_v55 }
 0x13b   :  { %547 = vmatmul.msk.f32.vlgmr.msra.gmra.mxu2 %vm352_vm14, %v345_v3  ;;  %549 = vmatmul.msk.f32.vlgmr.msra.gmra.mxu3 %vm352_vm14, %v345_v3  ;;  %v337_v12 = vsel %vm328_vm3, %v287_v51, %v299_v47  ;;  %v338_v7 = vsel %vm328_vm3, %v288_v11, %v300_v44 }
 0x13c   :  { %375 = vmatpush.msra.mxu0 %v337_v12  ;;  %395 = vmatpush.msra.mxu1 %v338_v7 }
 0x13d   :  { %v670_v15 = vpop.permute.xlu0 %669 }
 0x13e   :  { %v672_v20 = vunpack.i.h.bf16 %v670_v15  ;;  %v671_v21 = vunpack.i.l.bf16 %v670_v15  ;;  %376 = vmatpush.msra.mxu0 %v333_v17  ;;  %396 = vmatpush.msra.mxu1 %v334_v18 }
 0x13f   :  { %v350_v0 = vpop.permute.xlu1 %349 }
 0x140   :  { %v254_v32 = vsel %vm253_vm13, %v652_v36, %v671_v21  ;;  %v255_v53 = vsel %vm253_vm13, %v671_v21, %v672_v20 }
 0x141   :  { %v329_v37 = vsel %vm328_vm3, %v96_v46, %v254_v32  ;;  %v330_v22 = vsel %vm328_vm3, %v97_v40, %v255_v53 }
 0x142   :  { %377 = vmatpush.msra.mxu0 %v329_v37  ;;  %397 = vmatpush.msra.mxu1 %v330_v22 }
 0x143   :  { %541 = vmatmul.msk.f32.vlgmr.msra.gmra.mxu0 %vm352_vm14, %v345_v3  ;;  %543 = vmatmul.msk.f32.vlgmr.msra.gmra.mxu1 %vm352_vm14, %v345_v3 }
 0x1be   :  { %v461_v13 = vpop.f32.mrf.mxu2  ;;  %v481_v54 = vpop.f32.mrf.mxu3 }
 0x1bf   :  { %v462_v56 = vadd.f32 %v461_v13, %v350_v0  ;;  %v1037_v19 = vadd.f32 %v481_v54, %v350_v0 }
 0x1c0   :  { %v379_v34 = vpop.f32.mrf.mxu0  ;;  %v399_v16 = vpop.f32.mrf.mxu1 }
 0x1c1   :  { %v486_v23 = vand.u32 2147483647, %v462_v56  ;;  %v487_v24 = vand.u32 2147483647, %v1037_v19  ;;  %v1040_v42 = vadd.f32 %v379_v34, %v350_v0  ;;  %v1042_v59 = vadd.f32 %v399_v16, %v350_v0 }
 0x1c2   :  { %v484_v60 = vmax.f32 %v462_v56, 0.0  ;;  %v485_v4 = vmax.f32 %v1037_v19, 0.0 }
 0x1c3   :  { %v488_v25 = vsub.f32 0.0, %v486_v23  ;;  %v489_v26 = vsub.f32 0.0, %v487_v24  ;;  %v404_v27 = vand.u32 2147483647, %v1040_v42  ;;  %v405_v2 = vand.u32 2147483647, %v1042_v59 }
 0x1c4   :  { %v402_v14 = vmax.f32 %v1040_v42, 0.0  ;;  %v403_v37 = vmax.f32 %v1042_v59, 0.0 }
 0x1c5   :  { %v490_v49 = vmul.f32 1.442695, %v488_v25  ;;  %v492_v62 = vmul.f32 1.442695, %v489_v26  ;;  %v406_v5 = vsub.f32 0.0, %v404_v27  ;;  %v407_v28 = vsub.f32 0.0, %v405_v2 }
 0x1c7   :  { %675 = vpow2.f32 %v490_v49  ;;  %v408_v29 = vmul.f32 1.442695, %v406_v5  ;;  %v410_v30 = vmul.f32 1.442695, %v407_v28 }
 0x1c8   :  { %677 = vpow2.f32 %v492_v62 }
 0x1c9   :  { %679 = vpow2.f32 %v408_v29 }
 0x1ca   :  { %681 = vpow2.f32 %v410_v30 }
 0x1cd   :  { %v676_v31 = vpop.eup %675 }
 0x1ce   :  { %v678_v33 = vpop.eup %677  ;;  %v494_v35 = vadd.f32 1.0, %v676_v31  ;;  %v497_v41 = vmul.f32 -0.5, %v676_v31  ;;  %v500_v52 = vand.u32 2147483647, %v676_v31 }
 0x1cf   :  { %v503_v9 = vadd.f32 1.0, %v678_v33  ;;  %v680_v43 = vpop.eup %679  ;;  %v506_v45 = vmul.f32 -0.5, %v678_v33  ;;  %v509_v57 = vand.u32 2147483647, %v678_v33 }
 0x1d0   :  { %683 = vlog2.f32 %v494_v35  ;;  %v682_v50 = vpop.eup %681  ;;  %v412_v1 = vadd.f32 1.0, %v680_v43  ;;  %v415_v38 = vmul.f32 -0.5, %v680_v43  ;;  %v498_v39 = vadd.f32 1.0, %v497_v41 }
 0x1d1   :  { %685 = vlog2.f32 %v503_v9  ;;  %v421_v10 = vadd.f32 1.0, %v682_v50  ;;  %v424_v47 = vmul.f32 -0.5, %v682_v50  ;;  %v507_v55 = vadd.f32 1.0, %v506_v45 }
 0x1d2   :  { %687 = vlog2.f32 %v412_v1  ;;  %v416_v61 = vadd.f32 1.0, %v415_v38  ;;  %v499_v6 = vmul.f32 %v676_v31, %v498_v39  ;;  %v418_v8 = vand.u32 2147483647, %v680_v43 }
 0x1d3   :  { %689 = vlog2.f32 %v421_v10  ;;  %v425_v44 = vadd.f32 1.0, %v424_v47  ;;  %vm501_vm15 = vcmp.lt.f32.partialorder %v500_v52, 0.0004427343  ;;  %v508_v51 = vmul.f32 %v678_v33, %v507_v55 }
 0x1d4   :  { %v427_v11 = vand.u32 2147483647, %v682_v50  ;;  %vm510_vm0 = vcmp.lt.f32.partialorder %v509_v57, 0.0004427343  ;;  %v417_v20 = vmul.f32 %v680_v43, %v416_v61  ;;  %vm419_vm1 = vcmp.lt.f32.partialorder %v418_v8, 0.0004427343 }
 0x1d5   :  { %v426_v32 = vmul.f32 %v682_v50, %v425_v44 }
 0x1d6   :  { %v684_v58 = vpop.eup %683  ;;  %vm428_vm2 = vcmp.lt.f32.partialorder %v427_v11, 0.0004427343 }
 0x1d7   :  { %v686_v63 = vpop.eup %685  ;;  %v496_v3 = vmul.f32 0.6931472, %v684_v58 }
 0x1d8   :  { %v505_v48 = vmul.f32 0.6931472, %v686_v63  ;;  %v688_v12 = vpop.eup %687 }
 0x1d9   :  { %v502_v7 = vsel %vm501_vm15, %v499_v6, %v496_v3  ;;  %v690_v15 = vpop.eup %689  ;;  %v414_v36 = vmul.f32 0.6931472, %v688_v12 }
 0x1da   :  { %v512_v17 = vadd.f32 %v502_v7, %v484_v60  ;;  %v511_v18 = vsel %vm510_vm0, %v508_v51, %v505_v48  ;;  %v423_v46 = vmul.f32 0.6931472, %v690_v15 }
 0x1db   :  { %v513_v21 = vadd.f32 %v511_v18, %v485_v4  ;;  %v420_v53 = vsel %vm419_vm1, %v417_v20, %v414_v36 }
 0x1dc   :  { %v514_v40 = vmul.f32 2.0, %v512_v17  ;;  %v430_v0 = vadd.f32 %v420_v53, %v402_v14  ;;  %v429_v13 = vsel %vm428_vm2, %v426_v32, %v423_v46 }
 0x1dd   :  { %v515_v22 = vmul.f32 2.0, %v513_v21  ;;  %v431_v56 = vadd.f32 %v429_v13, %v403_v37 }
 0x1de   :  { %v550_v54 = vadd.f32 -1.0, %v514_v40  ;;  %v432_v34 = vmul.f32 2.0, %v430_v0 }
 0x1df   :  { %v551_v19 = vadd.f32 -1.0, %v515_v22  ;;  %v433_v16 = vmul.f32 2.0, %v431_v56 }
 0x1e0   :  { %519 = vst [vmem:[#allocation5 + $0x10] sm:$0xff] %v550_v54  ;;  %v544_v23 = vadd.f32 -1.0, %v432_v34 }
 0x1e1   :  { %520 = vst [vmem:[#allocation5 + $0x18] sm:$0xff] %v551_v19  ;;  %v545_v24 = vadd.f32 -1.0, %v433_v16 }
 0x1e2   :  { %436 = vst [vmem:[#allocation5] sm:$0xff] %v544_v23 }
 0x1e3   :  { %437 = vst [vmem:[#allocation5 + $0x8] sm:$0xff] %v545_v24 }
 0x1e4   :  { %533 = dma.vmem_to_hbm [thread:$0]  %s526_s30, 512, %s528_s6, [#allocation4], %s757_s7, %s757_s7, %s758_s8  }
 0x1e5   :  { %741 = dma.done.wait [#allocation4], 512  }
 0x1e6   :  { %742 = vsyncadd [#allocation4], 4294966784 }
 0x1e7   :  { %538 = vsyncpa [#allocation3], 1 }
 0x1e8   :  { %539 = vsyncpa [#allocation4], 1 }

</bundles_post_ra>
